<compile_context>
chip_gen: v7x
topology: tpu7x:2x2x1
jax: 0.10.0
libtpu: 0.0.40
codegen_flags: <defaults>
</compile_context>

<pallas_src>
import functools

import jax
import jax.numpy as jnp
from jax.experimental import pallas as pl
from jax.experimental.pallas import tpu as pltpu

IN_DIM = 3545
HID1 = 512
HID2 = 128
OUT_DIM = 27

IN_PAD = 3584      # next multiple of 128 above 3545
OUT_PAD = 128      # next multiple of 128 above 27
BN_EPS = 1e-5
NEG_BIG = -1e30    # baked into padded b lanes; acts as -inf in the softmax (f32 only)


def _affine_logsoftmax_kernel(
    x_ref,    # (TM, IN_DIM)    f32   raw input rows
    w_ref,    # (IN_PAD, OUT_PAD) bf16  collapsed fc1(+BN)·fc2·fc3, zero-padded
    b_ref,    # (1, OUT_PAD)    f32   collapsed bias, padded lanes = -1e30
    o_ref,    # (TM, OUT_PAD)   f32   log-probabilities (padded lanes garbage-ish)
    xp_ref,   # (TM, IN_PAD)    bf16  VMEM scratch: bf16-cast, zero-padded x
):
    # In-kernel cast + pad of x.  Padding lanes are explicitly zeroed every
    # step (39 lanes -> negligible) so the MXU never ingests stale VMEM, even
    # when the batch grid is sharded across TensorCores.
    xp_ref[:, :IN_DIM] = x_ref[...].astype(jnp.bfloat16)
    xp_ref[:, IN_DIM:] = jnp.zeros(
        (xp_ref.shape[0], IN_PAD - IN_DIM), xp_ref.dtype)

    # Single collapsed affine map (fc1+BN, fc2, dropout=identity, fc3).
    logits = jnp.dot(xp_ref[...], w_ref[...],
                     preferred_element_type=jnp.float32) + b_ref[...]

    # log_softmax in f32.  Padded lanes hold -1e30 bias: never the max, and
    # exp underflows to exactly 0, so the sum covers only the 27 real classes.
    m = jnp.max(logits, axis=-1, keepdims=True)
    sum_exp = jnp.sum(jnp.exp(logits - m), axis=-1, keepdims=True)
    o_ref[...] = logits - m - jnp.log(sum_exp)


def _pick_tm(batch):
    candidates = (1024, 512, 256, 128, 64, 32, 16, 8)
    divisors = [t for t in candidates if t <= batch and batch % t == 0]
    if not divisors:
        raise ValueError("batch must be a multiple of 8 for TPU sublane tiling")
    # Prefer the largest tile that still yields an even, >=2-step grid so the
    # "parallel" batch axis keeps both v7x TensorCores busy and balanced.
    for t in divisors:
        steps = batch // t
        if steps >= 2 and steps % 2 == 0:
            return t
    return divisors[0]


def _vmem_limit_bytes(tm):
    x_bytes = 2 * tm * IN_DIM * 4                      # double-buffered f32 x tiles
    scratch = tm * IN_PAD * 2                          # bf16 padded-x scratch
    out_bytes = 2 * tm * OUT_PAD * 4                   # double-buffered out tiles
    w_bytes = 2 * (IN_PAD * OUT_PAD * 2 + OUT_PAD * 4)  # double-buffered weights/bias
    total = x_bytes + scratch + out_bytes + w_bytes
    return min(max(int(total * 1.3), 32 << 20), 64 << 20)


@functools.partial(jax.jit, static_argnames=("tm",))
def style_classifier_forward(x, prep, tm=None):
    """x: (B, 3545) float32 -> (B, 27) float32 log-probabilities (eval mode)."""
    B = x.shape[0]
    if tm is None:
        tm = _pick_tm(B)
    assert B % tm == 0, "batch must be a multiple of the batch tile"

    out = pl.pallas_call(
        _affine_logsoftmax_kernel,
        out_shape=jax.ShapeDtypeStruct((B, OUT_PAD), jnp.float32),
        grid_spec=pltpu.PrefetchScalarGridSpec(
            num_scalar_prefetch=0,
            grid=(B // tm,),
            in_specs=[
                # raw x: batch-tiled, last block dim == full array dim (3545)
                pl.BlockSpec((tm, IN_DIM), lambda i: (i, 0)),
                # collapsed weight/bias: constant block index -> DMA'd once,
                # stay VMEM-resident while x/out tiles pipeline
                pl.BlockSpec((IN_PAD, OUT_PAD), lambda i: (0, 0)),
                pl.BlockSpec((1, OUT_PAD), lambda i: (0, 0)),
            ],
            out_specs=pl.BlockSpec((tm, OUT_PAD), lambda i: (i, 0)),
            scratch_shapes=[pltpu.VMEM((tm, IN_PAD), jnp.bfloat16)],
        ),
        compiler_params=pltpu.CompilerParams(
            dimension_semantics=("parallel",),   # batch tiles shard across TCs on v7x
            vmem_limit_bytes=_vmem_limit_bytes(tm),
        ),
    )(x, prep["w"], prep["b"])
    return out[:, :OUT_DIM]


def init_params(key):
    """Raw f32 parameters mirroring the PyTorch module (weights stored (in, out))."""
    ks = jax.random.split(key, 8)
    w1 = jax.random.normal(ks[0], (IN_DIM, HID1), jnp.float32) * 0.02
    b1 = jax.random.normal(ks[1], (HID1,), jnp.float32) * 0.01
    gamma = 1.0 + 0.1 * jax.random.normal(ks[2], (HID1,), jnp.float32)
    beta = 0.1 * jax.random.normal(ks[3], (HID1,), jnp.float32)
    mean = 0.1 * jax.random.normal(ks[4], (HID1,), jnp.float32)
    var = 1.0 + 0.1 * jax.random.uniform(ks[5], (HID1,), jnp.float32)
    w2 = jax.random.normal(ks[6], (HID1, HID2), jnp.float32) * 0.04
    b2 = jnp.zeros((HID2,), jnp.float32)
    w3 = jax.random.normal(ks[7], (HID2, OUT_DIM), jnp.float32) * 0.08
    b3 = jnp.zeros((OUT_DIM,), jnp.float32)
    return dict(w1=w1, b1=b1, gamma=gamma, beta=beta, mean=mean, var=var,
                w2=w2, b2=b2, w3=w3, b3=b3)


def prepare_params(p):
    """Fold BN into fc1, collapse all three linear layers into one affine map
    (composed in f32, cast to bf16 once), pad to TPU-friendly shapes."""
    inv_std = 1.0 / jnp.sqrt(p["var"] + BN_EPS)
    scale = p["gamma"] * inv_std                                   # (HID1,)
    w1f = p["w1"] * scale[None, :]                                 # BN scale folded
    b1f = (p["b1"] - p["mean"]) * scale + p["beta"]                # BN shift folded

    # Collapse: y = ((x@W1f + b1f)@W2 + b2)@W3 + b3  ==  x@W_all + b_all
    w_all = w1f @ (p["w2"] @ p["w3"])                              # (IN_DIM, OUT_DIM) f32
    b_all = (b1f @ p["w2"] + p["b2"]) @ p["w3"] + p["b3"]          # (OUT_DIM,)       f32

    w_pad = jnp.zeros((IN_PAD, OUT_PAD), jnp.float32)
    w_pad = w_pad.at[:IN_DIM, :OUT_DIM].set(w_all)
    b_pad = jnp.full((OUT_PAD,), NEG_BIG, jnp.float32).at[:OUT_DIM].set(b_all)

    return dict(w=w_pad.astype(jnp.bfloat16), b=b_pad.reshape(1, OUT_PAD))


def reference_forward_f32(x, p):
    """Pure-JAX f32 reference of the PyTorch eval-mode forward (not folded/collapsed)."""
    h = x @ p["w1"] + p["b1"]
    h = (h - p["mean"]) / jnp.sqrt(p["var"] + BN_EPS) * p["gamma"] + p["beta"]
    h = h @ p["w2"] + p["b2"]
    logits = h @ p["w3"] + p["b3"]
    return jax.nn.log_softmax(logits, axis=-1)


def reference_forward_matched(x, prep):
    """Pure-JAX reference using the same collapsed bf16 weights / f32-accumulate
    math as the kernel."""
    xb = x.astype(jnp.bfloat16)
    logits = jnp.dot(xb, prep["w"][:IN_DIM, :OUT_DIM],
                     preferred_element_type=jnp.float32) + prep["b"][0, :OUT_DIM]
    return jax.nn.log_softmax(logits, axis=-1)


if __name__ == "__main__":
    key = jax.random.PRNGKey(0)
    k_x, k_p = jax.random.split(key)

    B = 32  # small demo batch; auto tile -> tm=16 gives a 2-step pipelined grid
    x = jax.random.normal(k_x, (B, IN_DIM), jnp.float32)
    raw = init_params(k_p)
    prep = prepare_params(raw)

    out = style_classifier_forward(x, prep)
    out = jax.block_until_ready(out)
    assert out.shape == (B, OUT_DIM)

    # Tight check against a pure-JAX reference using the same collapsed bf16 math.
    ref_bf16 = reference_forward_matched(x, prep)
    assert jnp.allclose(out, ref_bf16, atol=3e-3, rtol=3e-3), \
        "mismatch vs collapsed-bf16 reference"

    # Sanity check against the full-f32, un-collapsed reference (bf16 rounding only).
    ref_f32 = reference_forward_f32(x, raw)
    max_diff = float(jnp.max(jnp.abs(out - ref_f32)))
    assert max_diff < 0.25, f"f32-reference drift too large: {max_diff}"

    print("KERNEL_OK")
</pallas_src>

<mosaic_0001>
module attributes {stable_mosaic.version = 11 : i64} {
  func.func @_affine_logsoftmax_kernel(%arg0: i32, %arg1: memref<16x3545xf32, #tpu.memory_space<vmem>>, %arg2: memref<3584x128xbf16, #tpu.memory_space<vmem>>, %arg3: memref<1x128xf32, #tpu.memory_space<vmem>>, %arg4: memref<16x128xf32, #tpu.memory_space<vmem>>, %arg5: memref<16x3584xbf16, #tpu.memory_space<vmem>>) attributes {dimension_semantics = [#tpu.dimension_semantics<parallel>], iteration_bounds = array<i64: 2>, scalar_prefetch = 0 : i64, scratch_operands = 1 : i64, tpu.core_type = #tpu.core_type<tc>, window_params = [{transform_indices = @transform_0, window_bounds = array<i64: 16, 3545>}, {pipeline_mode = #tpu.pipeline_mode<synchronous>, transform_indices = @transform_1, window_bounds = array<i64: 3584, 128>}, {pipeline_mode = #tpu.pipeline_mode<synchronous>, transform_indices = @transform_2, window_bounds = array<i64: 1, 128>}, {transform_indices = @transform_3, window_bounds = array<i64: 16, 128>}]} {
    %c0 = arith.constant 0 : index
    %c0_0 = arith.constant 0 : index
    %0 = vector.load %arg1[%c0, %c0_0] : memref<16x3545xf32, #tpu.memory_space<vmem>>, vector<16x3545xf32>
    %1 = arith.truncf %0 : vector<16x3545xf32> to vector<16x3545xbf16>
    %c0_1 = arith.constant 0 : index
    %c0_2 = arith.constant 0 : index
    %2 = vector.load %arg5[%c0_1, %c0_2] : memref<16x3584xbf16, #tpu.memory_space<vmem>>, vector<16x3545xbf16>
    tpu.vector_store %arg5[%c0_1, %c0_2], %1 {strides = array<i32>} : memref<16x3584xbf16, #tpu.memory_space<vmem>>, vector<16x3545xbf16>,
    %cst = arith.constant 0.000000e+00 : bf16
    %3 = vector.broadcast %cst : bf16 to vector<16x39xbf16>
    %c0_3 = arith.constant 0 : index
    %c3545 = arith.constant 3545 : index
    %4 = vector.load %arg5[%c0_3, %c3545] : memref<16x3584xbf16, #tpu.memory_space<vmem>>, vector<16x39xbf16>
    tpu.vector_store %arg5[%c0_3, %c3545], %3 {strides = array<i32>} : memref<16x3584xbf16, #tpu.memory_space<vmem>>, vector<16x39xbf16>,
    %c0_4 = arith.constant 0 : index
    %c0_5 = arith.constant 0 : index
    %5 = vector.load %arg5[%c0_4, %c0_5] : memref<16x3584xbf16, #tpu.memory_space<vmem>>, vector<16x3584xbf16>
    %c0_6 = arith.constant 0 : index
    %c0_7 = arith.constant 0 : index
    %6 = vector.load %arg2[%c0_6, %c0_7] : memref<3584x128xbf16, #tpu.memory_space<vmem>>, vector<3584x128xbf16>
    %cst_8 = arith.constant dense<0.000000e+00> : vector<16x128xf32>
    %7 = tpu.matmul %5, %6, %cst_8 {dimension_numbers = #tpu.dot_dimension_numbers<[1], [0], [0], [1], [0, 0, 1, 1], [], []>} : vector<16x3584xbf16>, vector<3584x128xbf16>, vector<16x128xf32> -> vector<16x128xf32>
    %c0_9 = arith.constant 0 : index
    %c0_10 = arith.constant 0 : index
    %8 = vector.load %arg3[%c0_9, %c0_10] : memref<1x128xf32, #tpu.memory_space<vmem>>, vector<1x128xf32>
    %9 = vector.broadcast %8 : vector<1x128xf32> to vector<16x128xf32>
    %10 = arith.addf %7, %9 : vector<16x128xf32>
    %cst_11 = arith.constant dense<0xFF800000> : vector<16xf32>
    %11 = vector.multi_reduction <maximumf>, %10, %cst_11 [1] : vector<16x128xf32> to vector<16xf32>
    %12 = vector.shape_cast %11 : vector<16xf32> to vector<16x1xf32>
    %13 = vector.broadcast %12 : vector<16x1xf32> to vector<16x128xf32>
    %14 = arith.subf %10, %13 : vector<16x128xf32>
    %15 = math.exp %14 : vector<16x128xf32>
    %cst_12 = arith.constant dense<0.000000e+00> : vector<16xf32>
    %16 = vector.multi_reduction <add>, %15, %cst_12 [1] : vector<16x128xf32> to vector<16xf32>
    %17 = vector.shape_cast %16 : vector<16xf32> to vector<16x1xf32>
    %18 = vector.broadcast %12 : vector<16x1xf32> to vector<16x128xf32>
    %19 = arith.subf %10, %18 : vector<16x128xf32>
    %20 = math.log %17 : vector<16x1xf32>
    %21 = vector.broadcast %20 : vector<16x1xf32> to vector<16x128xf32>
    %22 = arith.subf %19, %21 : vector<16x128xf32>
    %c0_13 = arith.constant 0 : index
    %c0_14 = arith.constant 0 : index
    %23 = vector.load %arg4[%c0_13, %c0_14] : memref<16x128xf32, #tpu.memory_space<vmem>>, vector<16x128xf32>
    tpu.vector_store %arg4[%c0_13, %c0_14], %22 {strides = array<i32>} : memref<16x128xf32, #tpu.memory_space<vmem>>, vector<16x128xf32>,
    return
  }
  func.func @transform_0(%arg0: i32) -> (i32, i32) {
    %c0_i32 = arith.constant 0 : i32
    %c0_i32_0 = arith.constant 0 : i32
    return %arg0, %c0_i32 : i32, i32
  }
  func.func @transform_1(%arg0: i32) -> (i32, i32) {
    %c0_i32 = arith.constant 0 : i32
    %c0_i32_0 = arith.constant 0 : i32
    %c0_i32_1 = arith.constant 0 : i32
    return %c0_i32, %c0_i32_0 : i32, i32
  }
  func.func @transform_2(%arg0: i32) -> (i32, i32) {
    %c0_i32 = arith.constant 0 : i32
    %c0_i32_0 = arith.constant 0 : i32
    %c0_i32_1 = arith.constant 0 : i32
    return %c0_i32, %c0_i32_0 : i32, i32
  }
  func.func @transform_3(%arg0: i32) -> (i32, i32) {
    %c0_i32 = arith.constant 0 : i32
    %c0_i32_0 = arith.constant 0 : i32
    return %arg0, %c0_i32 : i32, i32
  }
}

</mosaic_0001>

<bundles_post_ra>
// kernel: style_classifier_forward.1
= control target key start
LH: loop header
LB: loop body
LE: loop exit
PB: predicated region body
PF: predicated region fallthrough
CT: control target
= control target key end

     0   :  { %8 = vsyncpa [#allocation4], 0  ;;  %s4114_s0 = inlined_call_operand.hbm [shape: f32[32,3545], index: 0, kind: input, shape index: {}]   ;;  %s4115_s1 = inlined_call_operand.hbm [shape: bf16[3584,128], index: 1, kind: input, shape index: {}]   ;;  %s4116_s2 = inlined_call_operand.vmem [shape: f32[1,128], index: 2, kind: input, shape index: {}]   ;;  %s4117_s3 = inlined_call_operand.hbm [shape: f32[32,128], index: 3, kind: output, shape index: {}]  }
   0x1   :  { %10 = vsyncpa [#allocation4 + $0x1], 0 }
   0x2   :  { %11 = vsyncpa [#allocation7], 0 }
   0x3   :  { %12 = vsyncpa [#allocation5], 0 }
   0x4   :  { %14 = vsyncpa [#allocation5 + $0x1], 0  ;;  %s3851_s12 = smov 0   ;;  %s3853_s13 = smov 0  }
   0x5   :  { %s3855_s14 = smov 0   ;;  %s3857_s15 = smov 0  }
   0x6 LB: > { %s3872_s16 = sadd.s32 4294967295, %s3819_s15   ;;  %s2843_s17 = sadd.s32 4294967294, %s3819_s15   ;;  %s3819_s15 = sphi %s3857_s15, %s4137_s15   ;;  %s3815_s14 = sphi %s3855_s14, %s4136_s14   ;;  %s3811_s13 = sphi %s3853_s13, %s4135_s13   ;;  %s3807_s12 = sphi %s3851_s12, %s4134_s12  }
   0x7   : > { %p40_p0 = scmp.ne.s32.totalorder %s3811_s13, %s3807_s12  ;;  %p4118_p1 = scmp.eq.s32.totalorder %s3872_s16, 0 }
   0x8   : > { %p112_p3 = scmp.eq.s32.totalorder %s2843_s17, 1  ;;  %p2844_p5 = scmp.ge.s32.totalorder %s3819_s15, 1 }
   0x9   : > { %p3881_p4 = por %p4118_p1, %p40_p0  ;;  %p119_p7 = scmp.lt.s32.totalorder %s3819_s15, 3 }
   0xa   : > { %p3886_p6 = por %p112_p3, %p40_p0  ;;  %s3821_s21 = smov [#allocation6]  }
   0xb   : > { %s4121_s18 = scalar_select %p3881_p4, 1, 0 }
   0xc   : > { %s4122_s19 = scalar_select %p3886_p6, 1, 0 }
   0xd   : > { %p3891_p8 = pnand %p2844_p5, %p119_p7  ;;  %s131_s22 = sshll.u32 %s3821_s21, 4  ;;  %s3895_s22 = int_to_ptr.vmem [resolvable:$true] %s131_s22 }
   0xe   : > { %s3907_s24 = sadd.s32 1, %s3819_s15   ;;  %s27_s25 = sadd.s32 1, %s3815_s14 }
   0xf   : > { %s4123_s20 = scalar_select %p3891_p8, 1, 0 }
  0x10   : > { %p3403_p9 = pneg %p3891_p8  ;;  %s24_s26 = ssub.s32 %s3819_s15, %s3907_s24 }
  0x11   : > { %s3691_s29 = scalar_lea.hbm %s4115_s1, 28672 }
  0x12   : > { %p3902_p11 = pnand %p3403_p9, %p4118_p1  ;;  %p3692_p12 = scmp.ne.s32.totalorder %s4115_s1, %s3691_s29 }
  0x13   : > { %p3698_p5 = scmp.lt.u32.totalorder %s3691_s29, %s4115_s1 }
  0x14   : > { %p3693_p13 = pneg %p3902_p11 }
  0x16   : > { %p3694_p0 = pnand %p3693_p13, %p3692_p12 }
  0x18   : > { %p3695_p3 = pneg %p3694_p0 }
  0x1a   : > { %p3700_p7 = pnand %p3698_p5, %p3695_p3 }
  0x1c   : > { %3703 = shalt.err (!%p3700_p7)
}
  0x1d   : > { %s3704_s7 = scalar_lea.vmem %s3895_s22, 28672  ;;  %p3712_p2 = scmp.lt.s32.totalorder %s3895_s22, %s3895_s22 }
  0x1e   : > { %p3705_p9 = scmp.ne.s32.totalorder %s3895_s22, %s3704_s7  ;;  %p3713_p6 = scmp.lt.s32.totalorder %s3704_s7, %s3704_s7 }
  0x20   : > { %p3707_p10 = pnand %p3705_p9, %p3693_p13  ;;  %p3714_p4 = por %p3713_p6, %p3712_p2 }
  0x22   : > { %p3708_p1 = pneg %p3707_p10 }
  0x24   : > { %p3715_p8 = pnand %p3714_p4, %p3708_p1 }
  0x26   : > { %3718 = shalt.err (!%p3715_p8)
}
  0x27   : > { %s3822_s8 = smov 64   ;;  %s3823_s9 = smov 4  }
  0x28   : > { %3406 = dma.hbm_to_vmem [thread:$0]  (!%p3902_p11), %s4115_s1, 28672, %s3895_s22, [#allocation7], %s3822_s8, %s3822_s8, %s3823_s9  }
  0x29   : > { %p25_p2 = scmp.eq.s32.totalorder %s24_s26, 0  ;;  %p34_p1 = scmp.ne.s32.totalorder %s3815_s14, %s3811_s13 }
  0x2a   : > { %p35_p4 = scmp.eq.s32.totalorder %s3819_s15, 0  ;;  %p3416_p6 = scmp.lt.s32.totalorder %s3819_s15, 2 }
  0x2b   : > { %s3938_s17 = scalar_select %p25_p2, %s3815_s14, %s27_s25  }
  0x2c   : > { %p36_p8 = por %p35_p4, %p34_p1  ;;  %p4125_p10 = scmp.eq.s32.totalorder %s3872_s16, 1 }
  0x2d   : > { %s148_s27 = sand.u32 1, %s3815_s14   ;;  %s3393_s28 = smul.u32 7168, %s3819_s15 }
  0x2e   : > { %p3942_p12 = por %p4125_p10, %p34_p1  ;;  %s3392_s29 = smul.u32 448, %s148_s27 }
  0x2f   : > { %s3951_s4 = scalar_lea.hbm %s4114_s0, %s3393_s28  ;;  %p3953_p11 = pnand %p3416_p6, %p36_p8 }
  0x30   : > { %s152_s25 = scalar_lea.vmem [#allocation3], %s3392_s29  ;;  %s3959_s5 = scalar_lea.sflag [#allocation4], %s148_s27 }
  0x31   : > { %s160_s26 = sshll.u32 %s152_s25, 4  ;;  %s3719_s6 = scalar_lea.hbm %s3951_s4, 7168  ;;  %s3957_s26 = int_to_ptr.vmem [resolvable:$true] %s160_s26 }
  0x32   : > { %p3720_p13 = scmp.ne.s32.totalorder %s3951_s4, %s3719_s6  ;;  %p3721_p0 = pneg %p3953_p11 }
  0x33   : > { %s3724_s9 = scalar_lea.hbm %s4114_s0, 14336  ;;  %p3725_p7 = scmp.lt.u32.totalorder %s3951_s4, %s4114_s0 }
  0x34   : > { %p3722_p3 = pnand %p3721_p0, %p3720_p13  ;;  %p3726_p9 = scmp.lt.u32.totalorder %s3724_s9, %s3719_s6 }
  0x35   : > { %p3728_p1 = scmp.lt.u32.totalorder %s3719_s6, %s3951_s4 }
  0x36   : > { %p3723_p5 = pneg %p3722_p3  ;;  %p3727_p2 = por %p3726_p9, %p3725_p7 }
  0x38   : > { %p3729_p4 = por %p3728_p1, %p3727_p2 }
  0x3a   : > { %p3730_p6 = pnand %p3729_p4, %p3723_p5 }
  0x3c   : > { %3733 = shalt.err (!%p3730_p6)
}
  0x3d   : > { %s3734_s27 = scalar_lea.vmem %s3957_s26, 7168  ;;  %s3824_s28 = smov [#allocation3]  }
  0x3e   : > { %p3735_p8 = scmp.ne.s32.totalorder %s3957_s26, %s3734_s27  ;;  %s3739_s29 = sshll.u32 %s3824_s28, 4  ;;  %s3740_s29 = int_to_ptr.vmem [resolvable:$false] %s3739_s29 }
  0x3f   : > { %s3741_s23 = scalar_lea.vmem %s3740_s29, 14336  ;;  %p3742_p3 = scmp.lt.s32.totalorder %s3957_s26, %s3740_s29 }
  0x40   : > { %p3737_p10 = pnand %p3735_p8, %p3721_p0  ;;  %p3743_p7 = scmp.lt.s32.totalorder %s3741_s23, %s3734_s27 }
  0x42   : > { %p3738_p13 = pneg %p3737_p10  ;;  %p3744_p9 = por %p3743_p7, %p3742_p3 }
  0x44   : > { %p3745_p2 = pnand %p3744_p9, %p3738_p13 }
  0x46   : > { %3748 = shalt.err (!%p3745_p2)
}
  0x47   : > { %s3825_s30 = smov 3584   ;;  %s3826_s25 = smov 224  }
  0x48   : > { %3410 = dma.hbm_to_vmem [thread:$0]  (!%p3953_p11), %s3951_s4, 7168, %s3957_s26, %s3959_s5, %s3825_s30, %s3825_s30, %s3826_s25  }
  0x49   : > { %p4128_p0 = scmp.ne.s32.totalorder %s4123_s20, 0 }
  0x4a   : > { %s3990_s6 = sand.u32 (!%p4128_p0), 1, %s3811_s13   ;;  %p4129_p5 = scmp.ne.s32.totalorder (!%p4128_p0), %s4121_s18, 0 }
  0x4b   : > { %172 = sbr.rel (%p4128_p0) target bundleno = 864 (0x360), region = 32  ;;  %s175_s8 = scalar_lea.sflag (!%p4128_p0), [#allocation4], %s3990_s6 }
  0x4c   : > { %s3394_s7 = smul.u32 (!%p4128_p0), 448, %s3990_s6 }
  0x4e   : > { %s3994_s9 = scalar_lea.vmem (!%p4128_p0), [#allocation3], %s3394_s7 }
  0x52   : > { %3794 = dma.done.wait (%p4129_p5), %s175_s8, 7168  }
  0x53   : > { %3796 = vsyncadd (%p4129_p5), %s175_s8, 4294960128  ;;  %p4130_p11 = scmp.eq.s32.totalorder %s3872_s16, 0 }
  0x55   : > { %3798 = dma.done.wait (%p4130_p11), [#allocation7], 28672   ;;  %p4131_p1 = pmov %p4130_p11 }
  0x56   : > { %v3459_v0 = vld [vmem:[#allocation6 + $0x40] sm:$0xff]   ;;  %v3463_v4 = vld [vmem:[#allocation6 + $0x48] sm:$0xff]   ;;  %v3467_v8 = vld [vmem:[#allocation6 + $0x50] sm:$0xff]   ;;  %vm319_vm0 = vcmask 728064   ;;  %vm321_vm1 = vcmask 1048264   ;;  %s2852_s4 = sshll.u32 %s3990_s6, 4 }
  0x57   : > { %3800 = vsyncadd (%p4131_p1), [#allocation7], 4294938624  ;;  %v3460_v1 = vld [vmem:[#allocation6 + $0xc0] sm:$0xff]   ;;  %3084 = vmatprep.subr.bf16.mxu0 %v3459_v0  ;;  %v3464_v5 = vld [vmem:[#allocation6 + $0xc8] sm:$0xff]   ;;  %s204_s22 = scalar_lea.vmem [#allocation8], %s2852_s4  ;;  %s3083_s5 = sshll.u32 %s3872_s16, 8 }
  0x58   : > { %v3461_v2 = vld [vmem:[#allocation6] sm:$0xff]   ;;  %3106 = vmatprep.subr.bf16.mxu1 %v3460_v1  ;;  %v3465_v6 = vld [vmem:[#allocation6 + $0x8] sm:$0xff]   ;;  %v3468_v9 = vld [vmem:[#allocation6 + $0xd0] sm:$0xff]   ;;  %s2760_s26 = sshll.u32 %s204_s22, 4  ;;  %s4070_s27 = scalar_lea.hbm %s4117_s3, %s3083_s5  ;;  %s4065_s26 = int_to_ptr.vmem [resolvable:$true] %s2760_s26 }
  0x59   : > { %v3462_v3 = vld [vmem:[#allocation6 + $0x80] sm:$0xff]   ;;  %3085 = vmatpush3.bf16.msra.mxu0 %v3461_v2  ;;  %v3466_v7 = vld [vmem:[#allocation6 + $0x88] sm:$0xff]   ;;  %v3469_v10 = vld [vmem:[#allocation6 + $0x10] sm:$0xff]   ;;  %s2747_s28 = scalar_lea.sflag [#allocation5], %s3990_s6  ;;  %s3749_s29 = scalar_lea.vmem %s4065_s26, 256 }
  0x5a   : > { %3107 = vmatpush3.bf16.msra.mxu1 %v3462_v3  ;;  %3086 = vmatprep.subr.bf16.mxu0 %v3463_v4  ;;  %v3470_v11 = vld [vmem:[#allocation6 + $0x90] sm:$0xff]   ;;  %v3471_v12 = vld [vmem:[#allocation6 + $0x58] sm:$0xff]   ;;  %v3475_v16 = vld [vmem:[#allocation6 + $0x60] sm:$0xff]   ;;  %p3750_p4 = scmp.ne.s32.totalorder %s4065_s26, %s3749_s29  ;;  %s3828_s16 = smov [#allocation8]  }
  0x5b   : > { %3108 = vmatprep.subr.bf16.mxu1 %v3464_v5  ;;  %v3472_v13 = vld [vmem:[#allocation6 + $0xd8] sm:$0xff]   ;;  %v3476_v17 = vld [vmem:[#allocation6 + $0xe0] sm:$0xff]   ;;  %v3479_v20 = vld [vmem:[#allocation6 + $0x68] sm:$0xff]   ;;  %s3753_s23 = sshll.u32 %s3828_s16, 4  ;;  %s3754_s23 = int_to_ptr.vmem [resolvable:$false] %s3753_s23 }
  0x5c   : > { %v3473_v14 = vld [vmem:[#allocation6 + $0x18] sm:$0xff]   ;;  %v3477_v18 = vld [vmem:[#allocation6 + $0x20] sm:$0xff]   ;;  %v3480_v21 = vld [vmem:[#allocation6 + $0xe8] sm:$0xff]   ;;  %p3751_p6 = pnand %p3750_p4, %p3942_p12  ;;  %s3755_s30 = scalar_lea.vmem %s3754_s23, 512 }
  0x5d   : > { %3087 = vmatpush3.bf16.msra.mxu0 %v3465_v6  ;;  %v3474_v15 = vld [vmem:[#allocation6 + $0x98] sm:$0xff]   ;;  %v3478_v19 = vld [vmem:[#allocation6 + $0xa0] sm:$0xff]   ;;  %v3481_v22 = vld [vmem:[#allocation6 + $0x28] sm:$0xff]   ;;  %p3756_p10 = scmp.lt.s32.totalorder %s4065_s26, %s3754_s23  ;;  %p3757_p13 = scmp.lt.s32.totalorder %s3755_s30, %s3749_s29 }
  0x5e   : > { %3109 = vmatpush3.bf16.msra.mxu1 %v3466_v7  ;;  %3088 = vmatprep.subr.bf16.mxu0 %v3467_v8  ;;  %v3482_v23 = vld [vmem:[#allocation6 + $0xa8] sm:$0xff]   ;;  %v3483_v24 = vld [vmem:[#allocation6 + $0x70] sm:$0xff]   ;;  %v3487_v28 = vld [vmem:[#allocation6 + $0x78] sm:$0xff]   ;;  %p3752_p8 = pneg %p3751_p6 }
  0x5f   : > { %3110 = vmatprep.subr.bf16.mxu1 %v3468_v9  ;;  %v3484_v25 = vld [vmem:[#allocation6 + $0xf0] sm:$0xff]   ;;  %v3488_v29 = vld [vmem:[#allocation6 + $0xf8] sm:$0xff]   ;;  %v209_v32 = vld [vmem:[%s3994_s9 + $0x8] sm:$0xff]  ;;  %p3758_p3 = por %p3757_p13, %p3756_p10 }
  0x60   : > { %v3485_v26 = vld [vmem:[#allocation6 + $0x30] sm:$0xff]   ;;  %v3489_v30 = vld [vmem:[#allocation6 + $0x38] sm:$0xff]   ;;  %v237_v33 = vld [vmem:[%s3994_s9 + $0xe8] sm:$0xff] }
  0x61   : > { %3089 = vmatpush3.bf16.msra.mxu0 %v3469_v10  ;;  %v3486_v27 = vld [vmem:[#allocation6 + $0xb0] sm:$0xff]   ;;  %v3490_v31 = vld [vmem:[#allocation6 + $0xb8] sm:$0xff]   ;;  %v265_v35 = vpack.c.bf16 %v237_v33, %v209_v32  ;;  %v208_v37 = vld [vmem:[%s3994_s9] sm:$0xff]  ;;  %p3759_p7 = pnand %p3758_p3, %p3752_p8 }
  0x62   : > { %3111 = vmatpush3.bf16.msra.mxu1 %v3470_v11  ;;  %3090 = vmatprep.subr.bf16.mxu0 %v3471_v12  ;;  %v211_v34 = vld [vmem:[%s3994_s9 + $0x18] sm:$0xff]  ;;  %v236_v38 = vld [vmem:[%s3994_s9 + $0xe0] sm:$0xff]  ;;  %v210_v41 = vld [vmem:[%s3994_s9 + $0x10] sm:$0xff] }
  0x63   : > { %3112 = vmatprep.subr.bf16.mxu1 %v3472_v13  ;;  %v239_v36 = vld [vmem:[%s3994_s9 + $0xf8] sm:$0xff]  ;;  %v264_v40 = vpack.c.bf16 %v236_v38, %v208_v37  ;;  %v238_v42 = vld [vmem:[%s3994_s9 + $0xf0] sm:$0xff]  ;;  %2182 = vmatprep.mubr.bf16.mxu0 %v265_v35  ;;  %v3491_v44 = vld [vmem:[#allocation6 + $0x140] sm:$0xff]  }
  0x64   : > { %v267_v39 = vpack.c.bf16 %v239_v36, %v211_v34  ;;  %v266_v43 = vpack.c.bf16 %v238_v42, %v210_v41  ;;  %v3492_v45 = vld [vmem:[#allocation6 + $0x1c0] sm:$0xff]   ;;  %v3495_v48 = vld [vmem:[#allocation6 + $0x148] sm:$0xff]   ;;  %v3499_v52 = vld [vmem:[#allocation6 + $0x150] sm:$0xff]  }
  0x65   : > { %3091 = vmatpush3.bf16.msra.mxu0 %v3473_v14  ;;  %v3493_v46 = vld [vmem:[#allocation6 + $0x100] sm:$0xff]   ;;  %v3496_v49 = vld [vmem:[#allocation6 + $0x1c8] sm:$0xff]   ;;  %v3500_v53 = vld [vmem:[#allocation6 + $0x1d0] sm:$0xff]  }
  0x66   : > { %3113 = vmatpush3.bf16.msra.mxu1 %v3474_v15  ;;  %3092 = vmatprep.subr.bf16.mxu0 %v3475_v16  ;;  %v3494_v47 = vld [vmem:[#allocation6 + $0x180] sm:$0xff]   ;;  %v3497_v50 = vld [vmem:[#allocation6 + $0x108] sm:$0xff]   ;;  %v3501_v54 = vld [vmem:[#allocation6 + $0x110] sm:$0xff]  }
  0x67   : > { %3114 = vmatprep.subr.bf16.mxu1 %v3476_v17  ;;  %2223 = vmatprep.mubr.bf16.mxu1 %v267_v39  ;;  %v3498_v51 = vld [vmem:[#allocation6 + $0x188] sm:$0xff]   ;;  %v3502_v55 = vld [vmem:[#allocation6 + $0x190] sm:$0xff]   ;;  %v3503_v56 = vld [vmem:[#allocation6 + $0x158] sm:$0xff]  }
  0x68   : > { %v3504_v57 = vld [vmem:[#allocation6 + $0x1d8] sm:$0xff]   ;;  %v3507_v60 = vld [vmem:[#allocation6 + $0x160] sm:$0xff]   ;;  %v3511_v0 = vld [vmem:[#allocation6 + $0x168] sm:$0xff]  }
  0x69   : > { %3093 = vmatpush3.bf16.msra.mxu0 %v3477_v18  ;;  %v3505_v58 = vld [vmem:[#allocation6 + $0x118] sm:$0xff]   ;;  %v3508_v61 = vld [vmem:[#allocation6 + $0x1e0] sm:$0xff]   ;;  %v3512_v1 = vld [vmem:[#allocation6 + $0x1e8] sm:$0xff]  }
  0x6a   : > { %3115 = vmatpush3.bf16.msra.mxu1 %v3478_v19  ;;  %3094 = vmatprep.subr.bf16.mxu0 %v3479_v20  ;;  %v3506_v59 = vld [vmem:[#allocation6 + $0x198] sm:$0xff]   ;;  %v3509_v62 = vld [vmem:[#allocation6 + $0x120] sm:$0xff]   ;;  %v3513_v2 = vld [vmem:[#allocation6 + $0x128] sm:$0xff]  }
  0x6b   : > { %3116 = vmatprep.subr.bf16.mxu1 %v3480_v21  ;;  %v3510_v63 = vld [vmem:[#allocation6 + $0x1a0] sm:$0xff]   ;;  %v3514_v3 = vld [vmem:[#allocation6 + $0x1a8] sm:$0xff]   ;;  %v3515_v4 = vld [vmem:[#allocation6 + $0x170] sm:$0xff]  }
  0x6c   : > { %v3516_v5 = vld [vmem:[#allocation6 + $0x1f0] sm:$0xff]   ;;  %v3519_v8 = vld [vmem:[#allocation6 + $0x178] sm:$0xff]   ;;  %v213_v12 = vld [vmem:[%s3994_s9 + $0x28] sm:$0xff] }
  0x6d   : > { %3095 = vmatpush3.bf16.msra.mxu0 %v3481_v22  ;;  %v3517_v6 = vld [vmem:[#allocation6 + $0x130] sm:$0xff]   ;;  %v3520_v9 = vld [vmem:[#allocation6 + $0x1f8] sm:$0xff]   ;;  %v241_v13 = vld [vmem:[%s3994_s9 + $0x108] sm:$0xff] }
  0x6e   : > { %3117 = vmatpush3.bf16.msra.mxu1 %v3482_v23  ;;  %3096 = vmatprep.subr.bf16.mxu0 %v3483_v24  ;;  %v3518_v7 = vld [vmem:[#allocation6 + $0x1b0] sm:$0xff]   ;;  %v3521_v10 = vld [vmem:[#allocation6 + $0x138] sm:$0xff]   ;;  %v269_v16 = vpack.c.bf16 %v241_v13, %v213_v12  ;;  %v212_v18 = vld [vmem:[%s3994_s9 + $0x20] sm:$0xff] }
  0x6f   : > { %3118 = vmatprep.subr.bf16.mxu1 %v3484_v25  ;;  %v3522_v11 = vld [vmem:[#allocation6 + $0x1b8] sm:$0xff]   ;;  %v240_v19 = vld [vmem:[%s3994_s9 + $0x100] sm:$0xff]  ;;  %v214_v20 = vld [vmem:[%s3994_s9 + $0x30] sm:$0xff] }
  0x70   : > { %v215_v14 = vld [vmem:[%s3994_s9 + $0x38] sm:$0xff]  ;;  %v268_v21 = vpack.c.bf16 %v240_v19, %v212_v18  ;;  %v242_v22 = vld [vmem:[%s3994_s9 + $0x110] sm:$0xff]  ;;  %v3523_v24 = vld [vmem:[#allocation6 + $0x240] sm:$0xff]  }
  0x71   : > { %3097 = vmatpush3.bf16.msra.mxu0 %v3485_v26  ;;  %v243_v15 = vld [vmem:[%s3994_s9 + $0x118] sm:$0xff]  ;;  %v270_v23 = vpack.c.bf16 %v242_v22, %v214_v20  ;;  %v3524_v25 = vld [vmem:[#allocation6 + $0x2c0] sm:$0xff]   ;;  %v3531_v32 = vld [vmem:[#allocation6 + $0x250] sm:$0xff]  }
  0x72   : > { %3119 = vmatpush3.bf16.msra.mxu1 %v3486_v27  ;;  %3098 = vmatprep.subr.bf16.mxu0 %v3487_v28  ;;  %v271_v17 = vpack.c.bf16 %v243_v15, %v215_v14  ;;  %v3525_v26 = vld [vmem:[#allocation6 + $0x200] sm:$0xff]   ;;  %v3527_v28 = vld [vmem:[#allocation6 + $0x248] sm:$0xff]   ;;  %v3532_v33 = vld [vmem:[#allocation6 + $0x2d0] sm:$0xff]  }
  0x73   : > { %3120 = vmatprep.subr.bf16.mxu1 %v3488_v29  ;;  %v3526_v27 = vld [vmem:[#allocation6 + $0x280] sm:$0xff]   ;;  %v3528_v29 = vld [vmem:[#allocation6 + $0x2c8] sm:$0xff]   ;;  %v3533_v34 = vld [vmem:[#allocation6 + $0x210] sm:$0xff]  }
  0x74   : > { %v3534_v35 = vld [vmem:[#allocation6 + $0x290] sm:$0xff]   ;;  %v3535_v36 = vld [vmem:[#allocation6 + $0x258] sm:$0xff]   ;;  %v3540_v41 = vld [vmem:[#allocation6 + $0x2e0] sm:$0xff]  }
  0x75   : > { %3099 = vmatpush3.bf16.msra.mxu0 %v3489_v30  ;;  %v3529_v30 = vld [vmem:[#allocation6 + $0x208] sm:$0xff]   ;;  %v3536_v37 = vld [vmem:[#allocation6 + $0x2d8] sm:$0xff]   ;;  %v3541_v42 = vld [vmem:[#allocation6 + $0x220] sm:$0xff]  }
  0x76   : > { %3121 = vmatpush3.bf16.msra.mxu1 %v3490_v31  ;;  %3128 = vmatprep.subr.bf16.mxu0 %v3491_v44  ;;  %v3530_v31 = vld [vmem:[#allocation6 + $0x288] sm:$0xff]   ;;  %v3537_v38 = vld [vmem:[#allocation6 + $0x218] sm:$0xff]   ;;  %v3563_v12 = vld [vmem:[#allocation6 + $0x350] sm:$0xff]  }
  0x77   : > { %3150 = vmatprep.subr.bf16.mxu1 %v3492_v45  ;;  %v3538_v39 = vld [vmem:[#allocation6 + $0x298] sm:$0xff]   ;;  %v3543_v44 = vld [vmem:[#allocation6 + $0x268] sm:$0xff]   ;;  %v3564_v13 = vld [vmem:[#allocation6 + $0x3d0] sm:$0xff]  }
  0x78   : > { %2183 = vmatmul.mubr.bf16.vlgmr.msra.gmra.mrb[0].mxu0 %v264_v40  ;;  %v3539_v40 = vld [vmem:[#allocation6 + $0x260] sm:$0xff]   ;;  %v3544_v45 = vld [vmem:[#allocation6 + $0x2e8] sm:$0xff]   ;;  %v3565_v14 = vld [vmem:[#allocation6 + $0x310] sm:$0xff]  }
  0x79   : > { %2224 = vmatmul.mubr.bf16.vlgmr.msra.gmra.mrb[0].mxu1 %v266_v43  ;;  %3129 = vmatpush3.bf16.msra.mxu0 %v3493_v46  ;;  %v3542_v43 = vld [vmem:[#allocation6 + $0x2a0] sm:$0xff]   ;;  %v3545_v46 = vld [vmem:[#allocation6 + $0x228] sm:$0xff]   ;;  %v3566_v15 = vld [vmem:[#allocation6 + $0x390] sm:$0xff]  }
  0x7a   : > { %3151 = vmatpush3.bf16.msra.mxu1 %v3494_v47  ;;  %3130 = vmatprep.subr.bf16.mxu0 %v3495_v48  ;;  %v3546_v47 = vld [vmem:[#allocation6 + $0x2a8] sm:$0xff]   ;;  %v3547_v48 = vld [vmem:[#allocation6 + $0x270] sm:$0xff]   ;;  %v3569_v18 = vld [vmem:[#allocation6 + $0x318] sm:$0xff]  }
  0x7b   : > { %3152 = vmatprep.subr.bf16.mxu1 %v3496_v49  ;;  %2264 = vmatprep.mubr.bf16.mxu0 %v269_v16  ;;  %v3548_v49 = vld [vmem:[#allocation6 + $0x2f0] sm:$0xff]   ;;  %v3567_v16 = vld [vmem:[#allocation6 + $0x358] sm:$0xff]   ;;  %v3571_v20 = vld [vmem:[#allocation6 + $0x360] sm:$0xff]  }
  0x7c   : > { %2305 = vmatprep.mubr.bf16.mxu1 %v271_v17  ;;  %v3568_v17 = vld [vmem:[#allocation6 + $0x3d8] sm:$0xff]   ;;  %v3573_v22 = vld [vmem:[#allocation6 + $0x320] sm:$0xff]  }
  0x7d   : > { %3131 = vmatpush3.bf16.msra.mxu0 %v3497_v50  ;;  %v3549_v50 = vld [vmem:[#allocation6 + $0x230] sm:$0xff]   ;;  %v3570_v19 = vld [vmem:[#allocation6 + $0x398] sm:$0xff]  }
  0x7e   : > { %3153 = vmatpush3.bf16.msra.mxu1 %v3498_v51  ;;  %3132 = vmatprep.subr.bf16.mxu0 %v3499_v52  ;;  %v3550_v51 = vld [vmem:[#allocation6 + $0x2b0] sm:$0xff]   ;;  %v3551_v52 = vld [vmem:[#allocation6 + $0x278] sm:$0xff]  }
  0x7f   : > { %3154 = vmatprep.subr.bf16.mxu1 %v3500_v53  ;;  %v3552_v53 = vld [vmem:[#allocation6 + $0x2f8] sm:$0xff]  }
  0x81   : > { %3133 = vmatpush3.bf16.msra.mxu0 %v3501_v54  ;;  %v3553_v54 = vld [vmem:[#allocation6 + $0x238] sm:$0xff]  }
  0x82   : > { %3155 = vmatpush3.bf16.msra.mxu1 %v3502_v55  ;;  %3134 = vmatprep.subr.bf16.mxu0 %v3503_v56  ;;  %v3554_v55 = vld [vmem:[#allocation6 + $0x2b8] sm:$0xff]   ;;  %v217_v56 = vld [vmem:[%s3994_s9 + $0x48] sm:$0xff] }
  0x83   : > { %3156 = vmatprep.subr.bf16.mxu1 %v3504_v57  ;;  %v245_v57 = vld [vmem:[%s3994_s9 + $0x128] sm:$0xff] }
  0x85   : > { %3135 = vmatpush3.bf16.msra.mxu0 %v3505_v58  ;;  %v273_v58 = vpack.c.bf16 %v245_v57, %v217_v56  ;;  %v3595_v56 = vld [vmem:[#allocation6 + $0x450] sm:$0xff]  }
  0x86   : > { %3157 = vmatpush3.bf16.msra.mxu1 %v3506_v59  ;;  %3136 = vmatprep.subr.bf16.mxu0 %v3507_v60  ;;  %v219_v59 = vld [vmem:[%s3994_s9 + $0x58] sm:$0xff]  ;;  %v3596_v57 = vld [vmem:[#allocation6 + $0x4d0] sm:$0xff]  }
  0x87   : > { %3158 = vmatprep.subr.bf16.mxu1 %v3508_v61  ;;  %v247_v60 = vld [vmem:[%s3994_s9 + $0x138] sm:$0xff]  ;;  %v216_v61 = vld [vmem:[%s3994_s9 + $0x40] sm:$0xff] }
  0x89   : > { %3137 = vmatpush3.bf16.msra.mxu0 %v3509_v62  ;;  %v275_v62 = vpack.c.bf16 %v247_v60, %v219_v59  ;;  %v3598_v59 = vld [vmem:[#allocation6 + $0x490] sm:$0xff]   ;;  %v3599_v60 = vld [vmem:[#allocation6 + $0x458] sm:$0xff]  }
  0x8a   : > { %3159 = vmatpush3.bf16.msra.mxu1 %v3510_v63  ;;  %3138 = vmatprep.subr.bf16.mxu0 %v3511_v0  ;;  %v244_v63 = vld [vmem:[%s3994_s9 + $0x120] sm:$0xff]  ;;  %v218_v0 = vld [vmem:[%s3994_s9 + $0x50] sm:$0xff] }
  0x8b   : > { %3160 = vmatprep.subr.bf16.mxu1 %v3512_v1  ;;  %v246_v1 = vld [vmem:[%s3994_s9 + $0x130] sm:$0xff] }
  0x8d   : > { %3139 = vmatpush3.bf16.msra.mxu0 %v3513_v2  ;;  %v272_v2 = vpack.c.bf16 %v244_v63, %v216_v61  ;;  %v3600_v61 = vld [vmem:[#allocation6 + $0x4d8] sm:$0xff]  }
  0x8e   : > { %3161 = vmatpush3.bf16.msra.mxu1 %v3514_v3  ;;  %3140 = vmatprep.subr.bf16.mxu0 %v3515_v4  ;;  %v274_v3 = vpack.c.bf16 %v246_v1, %v218_v0  ;;  %v3555_v4 = vld [vmem:[#allocation6 + $0x340] sm:$0xff]   ;;  %v3602_v63 = vld [vmem:[#allocation6 + $0x498] sm:$0xff]  }
  0x8f   : > { %3162 = vmatprep.subr.bf16.mxu1 %v3516_v5  ;;  %v3556_v5 = vld [vmem:[#allocation6 + $0x3c0] sm:$0xff]  }
  0x90   : > { %v3603_v0 = vld [vmem:[#allocation6 + $0x460] sm:$0xff]  }
  0x91   : > { %3141 = vmatpush3.bf16.msra.mxu0 %v3517_v6  ;;  %v3557_v6 = vld [vmem:[#allocation6 + $0x300] sm:$0xff]  }
  0x92   : > { %3163 = vmatpush3.bf16.msra.mxu1 %v3518_v7  ;;  %3142 = vmatprep.subr.bf16.mxu0 %v3519_v8  ;;  %v3558_v7 = vld [vmem:[#allocation6 + $0x380] sm:$0xff]   ;;  %v3559_v8 = vld [vmem:[#allocation6 + $0x348] sm:$0xff]  }
  0x93   : > { %3164 = vmatprep.subr.bf16.mxu1 %v3520_v9  ;;  %v3560_v9 = vld [vmem:[#allocation6 + $0x3c8] sm:$0xff]   ;;  %v3604_v1 = vld [vmem:[#allocation6 + $0x4e0] sm:$0xff]  }
  0x95   : > { %3143 = vmatpush3.bf16.msra.mxu0 %v3521_v10  ;;  %v3561_v10 = vld [vmem:[#allocation6 + $0x308] sm:$0xff]  }
  0x96   : > { %3165 = vmatpush3.bf16.msra.mxu1 %v3522_v11  ;;  %3172 = vmatprep.subr.bf16.mxu0 %v3523_v24  ;;  %v3562_v11 = vld [vmem:[#allocation6 + $0x388] sm:$0xff]  }
  0x97   : > { %3194 = vmatprep.subr.bf16.mxu1 %v3524_v25  ;;  %v3575_v24 = vld [vmem:[#allocation6 + $0x368] sm:$0xff]  }
  0x98   : > { %2265 = vmatmul.mubr.bf16.vlgmr.msra.gmra.mrb[4].mxu0 %v268_v21  ;;  %v3572_v21 = vld [vmem:[#allocation6 + $0x3e0] sm:$0xff]   ;;  %v3576_v25 = vld [vmem:[#allocation6 + $0x3e8] sm:$0xff]  }
  0x99   : > { %2306 = vmatmul.mubr.bf16.vlgmr.msra.gmra.mrb[4].mxu1 %v270_v23  ;;  %3173 = vmatpush3.bf16.msra.mxu0 %v3525_v26  ;;  %v3574_v23 = vld [vmem:[#allocation6 + $0x3a0] sm:$0xff]   ;;  %v3577_v26 = vld [vmem:[#allocation6 + $0x328] sm:$0xff]  }
  0x9a   : > { %3195 = vmatpush3.bf16.msra.mxu1 %v3526_v27  ;;  %3174 = vmatprep.subr.bf16.mxu0 %v3527_v28  ;;  %v3578_v27 = vld [vmem:[#allocation6 + $0x3a8] sm:$0xff]   ;;  %v3579_v28 = vld [vmem:[#allocation6 + $0x370] sm:$0xff]  }
  0x9b   : > { %3196 = vmatprep.subr.bf16.mxu1 %v3528_v29  ;;  %2346 = vmatprep.mubr.bf16.mxu0 %v273_v58  ;;  %v3580_v29 = vld [vmem:[#allocation6 + $0x3f0] sm:$0xff]  }
  0x9c   : > { %2387 = vmatprep.mubr.bf16.mxu1 %v275_v62  ;;  %v3597_v58 = vld [vmem:[#allocation6 + $0x410] sm:$0xff]   ;;  %v3601_v62 = vld [vmem:[#allocation6 + $0x418] sm:$0xff]  }
  0x9d   : > { %3175 = vmatpush3.bf16.msra.mxu0 %v3529_v30  ;;  %v3581_v30 = vld [vmem:[#allocation6 + $0x330] sm:$0xff]  }
  0x9e   : > { %3197 = vmatpush3.bf16.msra.mxu1 %v3530_v31  ;;  %3176 = vmatprep.subr.bf16.mxu0 %v3531_v32  ;;  %v3582_v31 = vld [vmem:[#allocation6 + $0x3b0] sm:$0xff]   ;;  %v3583_v32 = vld [vmem:[#allocation6 + $0x378] sm:$0xff]  }
  0x9f   : > { %3198 = vmatprep.subr.bf16.mxu1 %v3532_v33  ;;  %v3584_v33 = vld [vmem:[#allocation6 + $0x3f8] sm:$0xff]  }
  0xa1   : > { %3177 = vmatpush3.bf16.msra.mxu0 %v3533_v34  ;;  %v3585_v34 = vld [vmem:[#allocation6 + $0x338] sm:$0xff]  }
  0xa2   : > { %3199 = vmatpush3.bf16.msra.mxu1 %v3534_v35  ;;  %3178 = vmatprep.subr.bf16.mxu0 %v3535_v36  ;;  %v3586_v35 = vld [vmem:[#allocation6 + $0x3b8] sm:$0xff]   ;;  %v221_v36 = vld [vmem:[%s3994_s9 + $0x68] sm:$0xff] }
  0xa3   : > { %3200 = vmatprep.subr.bf16.mxu1 %v3536_v37  ;;  %v249_v37 = vld [vmem:[%s3994_s9 + $0x148] sm:$0xff] }
  0xa5   : > { %3179 = vmatpush3.bf16.msra.mxu0 %v3537_v38  ;;  %v223_v38 = vld [vmem:[%s3994_s9 + $0x78] sm:$0xff] }
  0xa6   : > { %3201 = vmatpush3.bf16.msra.mxu1 %v3538_v39  ;;  %3180 = vmatprep.subr.bf16.mxu0 %v3539_v40  ;;  %v277_v39 = vpack.c.bf16 %v249_v37, %v221_v36  ;;  %v251_v40 = vld [vmem:[%s3994_s9 + $0x158] sm:$0xff]  ;;  %v3627_v36 = vld [vmem:[#allocation6 + $0x550] sm:$0xff]  }
  0xa7   : > { %3202 = vmatprep.subr.bf16.mxu1 %v3540_v41  ;;  %v220_v41 = vld [vmem:[%s3994_s9 + $0x60] sm:$0xff]  ;;  %v3628_v37 = vld [vmem:[#allocation6 + $0x5d0] sm:$0xff]  }
  0xa9   : > { %3181 = vmatpush3.bf16.msra.mxu0 %v3541_v42  ;;  %v248_v42 = vld [vmem:[%s3994_s9 + $0x140] sm:$0xff] }
  0xaa   : > { %3203 = vmatpush3.bf16.msra.mxu1 %v3542_v43  ;;  %3182 = vmatprep.subr.bf16.mxu0 %v3543_v44  ;;  %v279_v43 = vpack.c.bf16 %v251_v40, %v223_v38  ;;  %v276_v44 = vpack.c.bf16 %v248_v42, %v220_v41  ;;  %v3629_v38 = vld [vmem:[#allocation6 + $0x510] sm:$0xff]   ;;  %v3631_v40 = vld [vmem:[#allocation6 + $0x558] sm:$0xff]  }
  0xab   : > { %3204 = vmatprep.subr.bf16.mxu1 %v3544_v45  ;;  %v222_v45 = vld [vmem:[%s3994_s9 + $0x70] sm:$0xff]  ;;  %v3632_v41 = vld [vmem:[#allocation6 + $0x5d8] sm:$0xff]  }
  0xac   : > { %v3633_v42 = vld [vmem:[#allocation6 + $0x518] sm:$0xff]  }
  0xad   : > { %3183 = vmatpush3.bf16.msra.mxu0 %v3545_v46  ;;  %v250_v46 = vld [vmem:[%s3994_s9 + $0x150] sm:$0xff] }
  0xae   : > { %3205 = vmatpush3.bf16.msra.mxu1 %v3546_v47  ;;  %3184 = vmatprep.subr.bf16.mxu0 %v3547_v48  ;;  %v278_v47 = vpack.c.bf16 %v250_v46, %v222_v45  ;;  %v3587_v48 = vld [vmem:[#allocation6 + $0x440] sm:$0xff]  }
  0xaf   : > { %3206 = vmatprep.subr.bf16.mxu1 %v3548_v49  ;;  %v3588_v49 = vld [vmem:[#allocation6 + $0x4c0] sm:$0xff]  }
  0xb0   : > { %v3636_v45 = vld [vmem:[#allocation6 + $0x5e0] sm:$0xff]  }
  0xb1   : > { %3185 = vmatpush3.bf16.msra.mxu0 %v3549_v50  ;;  %v3589_v50 = vld [vmem:[#allocation6 + $0x400] sm:$0xff]  }
  0xb2   : > { %3207 = vmatpush3.bf16.msra.mxu1 %v3550_v51  ;;  %3186 = vmatprep.subr.bf16.mxu0 %v3551_v52  ;;  %v3590_v51 = vld [vmem:[#allocation6 + $0x480] sm:$0xff]   ;;  %v3591_v52 = vld [vmem:[#allocation6 + $0x448] sm:$0xff]  }
  0xb3   : > { %3208 = vmatprep.subr.bf16.mxu1 %v3552_v53  ;;  %v3592_v53 = vld [vmem:[#allocation6 + $0x4c8] sm:$0xff]   ;;  %v3637_v46 = vld [vmem:[#allocation6 + $0x520] sm:$0xff]  }
  0xb5   : > { %3187 = vmatpush3.bf16.msra.mxu0 %v3553_v54  ;;  %v3593_v54 = vld [vmem:[#allocation6 + $0x408] sm:$0xff]  }
  0xb6   : > { %3209 = vmatpush3.bf16.msra.mxu1 %v3554_v55  ;;  %3216 = vmatprep.subr.bf16.mxu0 %v3555_v4  ;;  %v3594_v55 = vld [vmem:[#allocation6 + $0x488] sm:$0xff]  }
  0xb7   : > { %3238 = vmatprep.subr.bf16.mxu1 %v3556_v5  ;;  %v3607_v4 = vld [vmem:[#allocation6 + $0x468] sm:$0xff]  }
  0xb8   : > { %2347 = vmatmul.mubr.bf16.vlgmr.msra.gmra.mrb[8].mxu0 %v272_v2  ;;  %v3605_v2 = vld [vmem:[#allocation6 + $0x420] sm:$0xff]   ;;  %v3608_v5 = vld [vmem:[#allocation6 + $0x4e8] sm:$0xff]  }
  0xb9   : > { %2388 = vmatmul.mubr.bf16.vlgmr.msra.gmra.mrb[8].mxu1 %v274_v3  ;;  %3217 = vmatpush3.bf16.msra.mxu0 %v3557_v6  ;;  %v3606_v3 = vld [vmem:[#allocation6 + $0x4a0] sm:$0xff]   ;;  %v3609_v6 = vld [vmem:[#allocation6 + $0x428] sm:$0xff]  }
  0xba   : > { %3239 = vmatpush3.bf16.msra.mxu1 %v3558_v7  ;;  %3218 = vmatprep.subr.bf16.mxu0 %v3559_v8  ;;  %v3610_v7 = vld [vmem:[#allocation6 + $0x4a8] sm:$0xff]   ;;  %v3611_v8 = vld [vmem:[#allocation6 + $0x470] sm:$0xff]  }
  0xbb   : > { %3240 = vmatprep.subr.bf16.mxu1 %v3560_v9  ;;  %2428 = vmatprep.mubr.bf16.mxu0 %v277_v39  ;;  %v3612_v9 = vld [vmem:[#allocation6 + $0x4f0] sm:$0xff]  }
  0xbc   : > { %2469 = vmatprep.mubr.bf16.mxu1 %v279_v43  ;;  %v3630_v39 = vld [vmem:[#allocation6 + $0x590] sm:$0xff]   ;;  %v3634_v43 = vld [vmem:[#allocation6 + $0x598] sm:$0xff]  }
  0xbd   : > { %3219 = vmatpush3.bf16.msra.mxu0 %v3561_v10  ;;  %v3613_v10 = vld [vmem:[#allocation6 + $0x430] sm:$0xff]  }
  0xbe   : > { %3241 = vmatpush3.bf16.msra.mxu1 %v3562_v11  ;;  %3220 = vmatprep.subr.bf16.mxu0 %v3563_v12  ;;  %v3614_v11 = vld [vmem:[#allocation6 + $0x4b0] sm:$0xff]   ;;  %v3615_v12 = vld [vmem:[#allocation6 + $0x478] sm:$0xff]  }
  0xbf   : > { %3242 = vmatprep.subr.bf16.mxu1 %v3564_v13  ;;  %v3616_v13 = vld [vmem:[#allocation6 + $0x4f8] sm:$0xff]  }
  0xc1   : > { %3221 = vmatpush3.bf16.msra.mxu0 %v3565_v14  ;;  %v3617_v14 = vld [vmem:[#allocation6 + $0x438] sm:$0xff]  }
  0xc2   : > { %3243 = vmatpush3.bf16.msra.mxu1 %v3566_v15  ;;  %3222 = vmatprep.subr.bf16.mxu0 %v3567_v16  ;;  %v3618_v15 = vld [vmem:[#allocation6 + $0x4b8] sm:$0xff]   ;;  %v225_v16 = vld [vmem:[%s3994_s9 + $0x88] sm:$0xff] }
  0xc3   : > { %3244 = vmatprep.subr.bf16.mxu1 %v3568_v17  ;;  %v253_v17 = vld [vmem:[%s3994_s9 + $0x168] sm:$0xff] }
  0xc5   : > { %3223 = vmatpush3.bf16.msra.mxu0 %v3569_v18  ;;  %v227_v18 = vld [vmem:[%s3994_s9 + $0x98] sm:$0xff] }
  0xc6   : > { %3245 = vmatpush3.bf16.msra.mxu1 %v3570_v19  ;;  %3224 = vmatprep.subr.bf16.mxu0 %v3571_v20  ;;  %v255_v19 = vld [vmem:[%s3994_s9 + $0x178] sm:$0xff]  ;;  %v281_v20 = vpack.c.bf16 %v253_v17, %v225_v16  ;;  %v3659_v16 = vld [vmem:[#allocation6 + $0x650] sm:$0xff]  }
  0xc7   : > { %3246 = vmatprep.subr.bf16.mxu1 %v3572_v21  ;;  %v283_v21 = vpack.c.bf16 %v255_v19, %v227_v18  ;;  %v3660_v17 = vld [vmem:[#allocation6 + $0x6d0] sm:$0xff]  }
  0xc8   : > { %v3661_v18 = vld [vmem:[#allocation6 + $0x610] sm:$0xff]  }
  0xc9   : > { %3225 = vmatpush3.bf16.msra.mxu0 %v3573_v22  ;;  %v224_v22 = vld [vmem:[%s3994_s9 + $0x80] sm:$0xff]  ;;  %v3662_v19 = vld [vmem:[#allocation6 + $0x690] sm:$0xff]  }
  0xca   : > { %3247 = vmatpush3.bf16.msra.mxu1 %v3574_v23  ;;  %3226 = vmatprep.subr.bf16.mxu0 %v3575_v24  ;;  %v252_v23 = vld [vmem:[%s3994_s9 + $0x160] sm:$0xff]  ;;  %v226_v24 = vld [vmem:[%s3994_s9 + $0x90] sm:$0xff] }
  0xcb   : > { %3248 = vmatprep.subr.bf16.mxu1 %v3576_v25  ;;  %v280_v25 = vpack.c.bf16 %v252_v23, %v224_v22  ;;  %v3665_v22 = vld [vmem:[#allocation6 + $0x618] sm:$0xff]  }
  0xcc   : > { %v3666_v23 = vld [vmem:[#allocation6 + $0x698] sm:$0xff]  }
  0xcd   : > { %3227 = vmatpush3.bf16.msra.mxu0 %v3577_v26  ;;  %v254_v26 = vld [vmem:[%s3994_s9 + $0x170] sm:$0xff] }
  0xce   : > { %3249 = vmatpush3.bf16.msra.mxu1 %v3578_v27  ;;  %3228 = vmatprep.subr.bf16.mxu0 %v3579_v28  ;;  %v282_v27 = vpack.c.bf16 %v254_v26, %v226_v24  ;;  %v3619_v28 = vld [vmem:[#allocation6 + $0x540] sm:$0xff]  }
  0xcf   : > { %3250 = vmatprep.subr.bf16.mxu1 %v3580_v29  ;;  %v3620_v29 = vld [vmem:[#allocation6 + $0x5c0] sm:$0xff]  }
  0xd0   : > { %v3667_v24 = vld [vmem:[#allocation6 + $0x660] sm:$0xff]  }
  0xd1   : > { %3229 = vmatpush3.bf16.msra.mxu0 %v3581_v30  ;;  %v3621_v30 = vld [vmem:[#allocation6 + $0x500] sm:$0xff]  }
  0xd2   : > { %3251 = vmatpush3.bf16.msra.mxu1 %v3582_v31  ;;  %3230 = vmatprep.subr.bf16.mxu0 %v3583_v32  ;;  %v3622_v31 = vld [vmem:[#allocation6 + $0x580] sm:$0xff]   ;;  %v3623_v32 = vld [vmem:[#allocation6 + $0x548] sm:$0xff]  }
  0xd3   : > { %3252 = vmatprep.subr.bf16.mxu1 %v3584_v33  ;;  %v3624_v33 = vld [vmem:[#allocation6 + $0x5c8] sm:$0xff]   ;;  %v3669_v26 = vld [vmem:[#allocation6 + $0x620] sm:$0xff]  }
  0xd5   : > { %3231 = vmatpush3.bf16.msra.mxu0 %v3585_v34  ;;  %v3625_v34 = vld [vmem:[#allocation6 + $0x508] sm:$0xff]  }
  0xd6   : > { %3253 = vmatpush3.bf16.msra.mxu1 %v3586_v35  ;;  %3260 = vmatprep.subr.bf16.mxu0 %v3587_v48  ;;  %v3626_v35 = vld [vmem:[#allocation6 + $0x588] sm:$0xff]  }
  0xd7   : > { %3282 = vmatprep.subr.bf16.mxu1 %v3588_v49  ;;  %v3639_v48 = vld [vmem:[#allocation6 + $0x568] sm:$0xff]  }
  0xd8   : > { %2429 = vmatmul.mubr.bf16.vlgmr.msra.gmra.mrb[12].mxu0 %v276_v44  ;;  %v3635_v44 = vld [vmem:[#allocation6 + $0x560] sm:$0xff]   ;;  %v3640_v49 = vld [vmem:[#allocation6 + $0x5e8] sm:$0xff]  }
  0xd9   : > { %2470 = vmatmul.mubr.bf16.vlgmr.msra.gmra.mrb[12].mxu1 %v278_v47  ;;  %3261 = vmatpush3.bf16.msra.mxu0 %v3589_v50  ;;  %v3638_v47 = vld [vmem:[#allocation6 + $0x5a0] sm:$0xff]   ;;  %v3641_v50 = vld [vmem:[#allocation6 + $0x528] sm:$0xff]  }
  0xda   : > { %3283 = vmatpush3.bf16.msra.mxu1 %v3590_v51  ;;  %3262 = vmatprep.subr.bf16.mxu0 %v3591_v52  ;;  %v3642_v51 = vld [vmem:[#allocation6 + $0x5a8] sm:$0xff]   ;;  %v3643_v52 = vld [vmem:[#allocation6 + $0x570] sm:$0xff]  }
  0xdb   : > { %3284 = vmatprep.subr.bf16.mxu1 %v3592_v53  ;;  %2510 = vmatprep.mubr.bf16.mxu0 %v281_v20  ;;  %v3644_v53 = vld [vmem:[#allocation6 + $0x5f0] sm:$0xff]   ;;  %v3663_v20 = vld [vmem:[#allocation6 + $0x658] sm:$0xff]  }
  0xdc   : > { %2551 = vmatprep.mubr.bf16.mxu1 %v283_v21  ;;  %v3664_v21 = vld [vmem:[#allocation6 + $0x6d8] sm:$0xff]  }
  0xdd   : > { %3263 = vmatpush3.bf16.msra.mxu0 %v3593_v54  ;;  %v3645_v54 = vld [vmem:[#allocation6 + $0x530] sm:$0xff]  }
  0xde   : > { %3285 = vmatpush3.bf16.msra.mxu1 %v3594_v55  ;;  %3264 = vmatprep.subr.bf16.mxu0 %v3595_v56  ;;  %v3646_v55 = vld [vmem:[#allocation6 + $0x5b0] sm:$0xff]   ;;  %v3647_v56 = vld [vmem:[#allocation6 + $0x578] sm:$0xff]  }
  0xdf   : > { %3286 = vmatprep.subr.bf16.mxu1 %v3596_v57  ;;  %v3648_v57 = vld [vmem:[#allocation6 + $0x5f8] sm:$0xff]  }
  0xe1   : > { %3265 = vmatpush3.bf16.msra.mxu0 %v3597_v58  ;;  %v3649_v58 = vld [vmem:[#allocation6 + $0x538] sm:$0xff]  }
  0xe2   : > { %3287 = vmatpush3.bf16.msra.mxu1 %v3598_v59  ;;  %3266 = vmatprep.subr.bf16.mxu0 %v3599_v60  ;;  %v3650_v59 = vld [vmem:[#allocation6 + $0x5b8] sm:$0xff]   ;;  %v229_v60 = vld [vmem:[%s3994_s9 + $0xa8] sm:$0xff] }
  0xe3   : > { %3288 = vmatprep.subr.bf16.mxu1 %v3600_v61  ;;  %v257_v61 = vld [vmem:[%s3994_s9 + $0x188] sm:$0xff] }
  0xe5   : > { %3267 = vmatpush3.bf16.msra.mxu0 %v3601_v62  ;;  %v285_v62 = vpack.c.bf16 %v257_v61, %v229_v60 }
  0xe6   : > { %3289 = vmatpush3.bf16.msra.mxu1 %v3602_v63  ;;  %3268 = vmatprep.subr.bf16.mxu0 %v3603_v0  ;;  %v231_v63 = vld [vmem:[%s3994_s9 + $0xb8] sm:$0xff] }
  0xe7   : > { %3290 = vmatprep.subr.bf16.mxu1 %v3604_v1  ;;  %v259_v0 = vld [vmem:[%s3994_s9 + $0x198] sm:$0xff]  ;;  %v228_v1 = vld [vmem:[%s3994_s9 + $0xa0] sm:$0xff] }
  0xe9   : > { %3269 = vmatpush3.bf16.msra.mxu0 %v3605_v2  ;;  %v287_v2 = vpack.c.bf16 %v259_v0, %v231_v63 }
  0xea   : > { %3291 = vmatpush3.bf16.msra.mxu1 %v3606_v3  ;;  %3270 = vmatprep.subr.bf16.mxu0 %v3607_v4  ;;  %v256_v3 = vld [vmem:[%s3994_s9 + $0x180] sm:$0xff]  ;;  %v230_v4 = vld [vmem:[%s3994_s9 + $0xb0] sm:$0xff] }
  0xeb   : > { %3292 = vmatprep.subr.bf16.mxu1 %v3608_v5  ;;  %v258_v5 = vld [vmem:[%s3994_s9 + $0x190] sm:$0xff] }
  0xed   : > { %3271 = vmatpush3.bf16.msra.mxu0 %v3609_v6  ;;  %v284_v6 = vpack.c.bf16 %v256_v3, %v228_v1 }
  0xee   : > { %3293 = vmatpush3.bf16.msra.mxu1 %v3610_v7  ;;  %3272 = vmatprep.subr.bf16.mxu0 %v3611_v8  ;;  %v286_v7 = vpack.c.bf16 %v258_v5, %v230_v4  ;;  %v3651_v8 = vld [vmem:[#allocation6 + $0x640] sm:$0xff]  }
  0xef   : > { %3294 = vmatprep.subr.bf16.mxu1 %v3612_v9  ;;  %v3652_v9 = vld [vmem:[#allocation6 + $0x6c0] sm:$0xff]  }
  0xf1   : > { %3273 = vmatpush3.bf16.msra.mxu0 %v3613_v10  ;;  %v3653_v10 = vld [vmem:[#allocation6 + $0x600] sm:$0xff]  }
  0xf2   : > { %3295 = vmatpush3.bf16.msra.mxu1 %v3614_v11  ;;  %3274 = vmatprep.subr.bf16.mxu0 %v3615_v12  ;;  %v3654_v11 = vld [vmem:[#allocation6 + $0x680] sm:$0xff]   ;;  %v3655_v12 = vld [vmem:[#allocation6 + $0x648] sm:$0xff]  }
  0xf3   : > { %3296 = vmatprep.subr.bf16.mxu1 %v3616_v13  ;;  %v3656_v13 = vld [vmem:[#allocation6 + $0x6c8] sm:$0xff]  }
  0xf5   : > { %3275 = vmatpush3.bf16.msra.mxu0 %v3617_v14  ;;  %v3657_v14 = vld [vmem:[#allocation6 + $0x608] sm:$0xff]  }
  0xf6   : > { %3297 = vmatpush3.bf16.msra.mxu1 %v3618_v15  ;;  %3304 = vmatprep.subr.bf16.mxu0 %v3619_v28  ;;  %v3658_v15 = vld [vmem:[#allocation6 + $0x688] sm:$0xff]  }
  0xf7   : > { %3326 = vmatprep.subr.bf16.mxu1 %v3620_v29  ;;  %v3671_v28 = vld [vmem:[#allocation6 + $0x668] sm:$0xff]  }
  0xf8   : > { %2511 = vmatmul.mubr.bf16.vlgmr.msra.gmra.mrb[16].mxu0 %v280_v25  ;;  %v3668_v25 = vld [vmem:[#allocation6 + $0x6e0] sm:$0xff]   ;;  %v3672_v29 = vld [vmem:[#allocation6 + $0x6e8] sm:$0xff]  }
  0xf9   : > { %2552 = vmatmul.mubr.bf16.vlgmr.msra.gmra.mrb[16].mxu1 %v282_v27  ;;  %3305 = vmatpush3.bf16.msra.mxu0 %v3621_v30  ;;  %v3670_v27 = vld [vmem:[#allocation6 + $0x6a0] sm:$0xff]   ;;  %v3673_v30 = vld [vmem:[#allocation6 + $0x628] sm:$0xff]  }
  0xfa   : > { %3327 = vmatpush3.bf16.msra.mxu1 %v3622_v31  ;;  %3306 = vmatprep.subr.bf16.mxu0 %v3623_v32  ;;  %v3674_v31 = vld [vmem:[#allocation6 + $0x6a8] sm:$0xff]   ;;  %v3675_v32 = vld [vmem:[#allocation6 + $0x670] sm:$0xff]  }
  0xfb   : > { %3328 = vmatprep.subr.bf16.mxu1 %v3624_v33  ;;  %2592 = vmatprep.mubr.bf16.mxu0 %v285_v62  ;;  %v3676_v33 = vld [vmem:[#allocation6 + $0x6f0] sm:$0xff]  }
  0xfc   : > { %2633 = vmatprep.mubr.bf16.mxu1 %v287_v2 }
  0xfd   : > { %3307 = vmatpush3.bf16.msra.mxu0 %v3625_v34  ;;  %v3677_v34 = vld [vmem:[#allocation6 + $0x630] sm:$0xff]  }
  0xfe   : > { %3329 = vmatpush3.bf16.msra.mxu1 %v3626_v35  ;;  %3308 = vmatprep.subr.bf16.mxu0 %v3627_v36  ;;  %v3678_v35 = vld [vmem:[#allocation6 + $0x6b0] sm:$0xff]   ;;  %v3679_v36 = vld [vmem:[#allocation6 + $0x678] sm:$0xff]  }
  0xff   : > { %3330 = vmatprep.subr.bf16.mxu1 %v3628_v37  ;;  %v3680_v37 = vld [vmem:[#allocation6 + $0x6f8] sm:$0xff]  }
 0x101   : > { %3309 = vmatpush3.bf16.msra.mxu0 %v3629_v38  ;;  %v3681_v38 = vld [vmem:[#allocation6 + $0x638] sm:$0xff]  }
 0x102   : > { %3331 = vmatpush3.bf16.msra.mxu1 %v3630_v39  ;;  %3310 = vmatprep.subr.bf16.mxu0 %v3631_v40  ;;  %v3682_v39 = vld [vmem:[#allocation6 + $0x6b8] sm:$0xff]   ;;  %v233_v40 = vld [vmem:[%s3994_s9 + $0xc8] sm:$0xff] }
 0x103   : > { %3332 = vmatprep.subr.bf16.mxu1 %v3632_v41  ;;  %v261_v41 = vld [vmem:[%s3994_s9 + $0x1a8] sm:$0xff] }
 0x105   : > { %3311 = vmatpush3.bf16.msra.mxu0 %v3633_v42  ;;  %v235_v42 = vld [vmem:[%s3994_s9 + $0xd8] sm:$0xff] }
 0x106   : > { %3333 = vmatpush3.bf16.msra.mxu1 %v3634_v43  ;;  %3312 = vmatprep.subr.bf16.mxu0 %v3635_v44  ;;  %v289_v43 = vpack.c.bf16 %v261_v41, %v233_v40  ;;  %v263_v44 = vld [vmem:[%s3994_s9 + $0x1b8] sm:$0xff] }
 0x107   : > { %3334 = vmatprep.subr.bf16.mxu1 %v3636_v45  ;;  %v232_v45 = vld [vmem:[%s3994_s9 + $0xc0] sm:$0xff] }
 0x109   : > { %3313 = vmatpush3.bf16.msra.mxu0 %v3637_v46  ;;  %v260_v46 = vld [vmem:[%s3994_s9 + $0x1a0] sm:$0xff] }
 0x10a   : > { %3335 = vmatpush3.bf16.msra.mxu1 %v3638_v47  ;;  %3314 = vmatprep.subr.bf16.mxu0 %v3639_v48  ;;  %v291_v47 = vpack.c.bf16 %v263_v44, %v235_v42  ;;  %v288_v48 = vpack.c.bf16 %v260_v46, %v232_v45 }
 0x10b   : > { %3336 = vmatprep.subr.bf16.mxu1 %v3640_v49  ;;  %v234_v49 = vld [vmem:[%s3994_s9 + $0xd0] sm:$0xff] }
 0x10c   : > { %320 = vst.msk [vmem:[#allocation2 + $0xd8] sm:$0xff] %vm319_vm0, %v291_v47 }
 0x10d   : > { %3315 = vmatpush3.bf16.msra.mxu0 %v3641_v50  ;;  %v262_v50 = vld [vmem:[%s3994_s9 + $0x1b0] sm:$0xff] }
 0x10e   : > { %3337 = vmatpush3.bf16.msra.mxu1 %v3642_v51  ;;  %3316 = vmatprep.subr.bf16.mxu0 %v3643_v52  ;;  %v290_v51 = vpack.c.bf16 %v262_v50, %v234_v49  ;;  %v3827_v52 = vmov 0  }
 0x10f   : > { %3338 = vmatprep.subr.bf16.mxu1 %v3644_v53  ;;  %322 = vst.msk [vmem:[#allocation2 + $0xd8] sm:$0xff] %vm321_vm1, %v3827_v52 }
 0x111   : > { %3317 = vmatpush3.bf16.msra.mxu0 %v3645_v54 }
 0x112   : > { %3339 = vmatpush3.bf16.msra.mxu1 %v3646_v55  ;;  %3318 = vmatprep.subr.bf16.mxu0 %v3647_v56  ;;  %v2853_v55 = vld [vmem:[%s4116_s2] ss:$0 sm:$0xff] }
 0x113   : > { %3340 = vmatprep.subr.bf16.mxu1 %v3648_v57 }
 0x115   : > { %3319 = vmatpush3.bf16.msra.mxu0 %v3649_v58 }
 0x116   : > { %3341 = vmatpush3.bf16.msra.mxu1 %v3650_v59  ;;  %3348 = vmatprep.subr.bf16.mxu0 %v3651_v8  ;;  %v350_v2 = vld [vmem:[#allocation2 + $0xd8] sm:$0xff] }
 0x117   : > { %3370 = vmatprep.subr.bf16.mxu1 %v3652_v9 }
 0x118   : > { %2593 = vmatmul.mubr.bf16.vlgmr.msra.gmra.mrb[20].mxu0 %v284_v6 }
 0x119   : > { %2634 = vmatmul.mubr.bf16.vlgmr.msra.gmra.mrb[20].mxu1 %v286_v7  ;;  %3349 = vmatpush3.bf16.msra.mxu0 %v3653_v10 }
 0x11a   : > { %3371 = vmatpush3.bf16.msra.mxu1 %v3654_v11  ;;  %3350 = vmatprep.subr.bf16.mxu0 %v3655_v12 }
 0x11b   : > { %3372 = vmatprep.subr.bf16.mxu1 %v3656_v13  ;;  %2674 = vmatprep.mubr.bf16.mxu0 %v289_v43 }
 0x11c   : > { %2715 = vmatprep.mubr.bf16.mxu1 %v350_v2 }
 0x11d   : > { %3351 = vmatpush3.bf16.msra.mxu0 %v3657_v14 }
 0x11e   : > { %3373 = vmatpush3.bf16.msra.mxu1 %v3658_v15  ;;  %3352 = vmatprep.subr.bf16.mxu0 %v3659_v16 }
 0x11f   : > { %3374 = vmatprep.subr.bf16.mxu1 %v3660_v17 }
 0x121   : > { %3353 = vmatpush3.bf16.msra.mxu0 %v3661_v18 }
 0x122   : > { %3375 = vmatpush3.bf16.msra.mxu1 %v3662_v19  ;;  %3354 = vmatprep.subr.bf16.mxu0 %v3663_v20 }
 0x123   : > { %3376 = vmatprep.subr.bf16.mxu1 %v3664_v21 }
 0x125   : > { %3355 = vmatpush3.bf16.msra.mxu0 %v3665_v22 }
 0x126   : > { %3377 = vmatpush3.bf16.msra.mxu1 %v3666_v23  ;;  %3356 = vmatprep.subr.bf16.mxu0 %v3667_v24 }
 0x127   : > { %3378 = vmatprep.subr.bf16.mxu1 %v3668_v25 }
 0x129   : > { %3357 = vmatpush3.bf16.msra.mxu0 %v3669_v26 }
 0x12a   : > { %3379 = vmatpush3.bf16.msra.mxu1 %v3670_v27  ;;  %3358 = vmatprep.subr.bf16.mxu0 %v3671_v28 }
 0x12b   : > { %3380 = vmatprep.subr.bf16.mxu1 %v3672_v29 }
 0x12d   : > { %3359 = vmatpush3.bf16.msra.mxu0 %v3673_v30 }
 0x12e   : > { %3381 = vmatpush3.bf16.msra.mxu1 %v3674_v31  ;;  %3360 = vmatprep.subr.bf16.mxu0 %v3675_v32 }
 0x12f   : > { %3382 = vmatprep.subr.bf16.mxu1 %v3676_v33 }
 0x131   : > { %3361 = vmatpush3.bf16.msra.mxu0 %v3677_v34 }
 0x132   : > { %3383 = vmatpush3.bf16.msra.mxu1 %v3678_v35  ;;  %3362 = vmatprep.subr.bf16.mxu0 %v3679_v36 }
 0x133   : > { %3384 = vmatprep.subr.bf16.mxu1 %v3680_v37 }
 0x135   : > { %3363 = vmatpush3.bf16.msra.mxu0 %v3681_v38 }
 0x136   : > { %3385 = vmatpush3.bf16.msra.mxu1 %v3682_v39 }
 0x138   : > { %2675 = vmatmul.mubr.bf16.vlgmr.msra.gmra.mrb[24].mxu0 %v288_v48 }
 0x139   : > { %2716 = vmatmul.mubr.bf16.vlgmr.msra.gmra.mrb[24].mxu1 %v290_v51 }
 0x14b   : > { %v3100_v53 = vpop.f32.mrb[0].mxu0 }
 0x14c   : > { %v3122_v54 = vpop.f32.mrb[0].mxu1  ;;  %v3101_v56 = vpop.f32.mrb[1].mxu0 }
 0x14d   : > { %v3102_v57 = vadd.f32 %v3101_v56, %v3100_v53  ;;  %v3123_v58 = vpop.f32.mrb[1].mxu1  ;;  %v3103_v59 = vpop.f32.mrb[2].mxu0 }
 0x14e   : > { %v3124_v60 = vadd.f32 %v3123_v58, %v3122_v54  ;;  %v3125_v61 = vpop.f32.mrb[2].mxu1  ;;  %v3104_v62 = vpop.f32.mrb[3].mxu0 }
 0x14f   : > { %v2185_v63 = vadd.f32 %v3102_v57, %v2853_v55  ;;  %v3105_v0 = vadd.f32 %v3104_v62, %v3103_v59  ;;  %v3126_v1 = vpop.f32.mrb[3].mxu1 }
 0x150   : > { %v3127_v3 = vadd.f32 %v3126_v1, %v3125_v61 }
 0x151   : > { %v2226_v4 = vadd.f32 %v3124_v60, %v2185_v63  ;;  %v2188_v5 = vadd.f32 %v3105_v0, %v2853_v55 }
 0x153   : > { %v2229_v6 = vadd.f32 %v3127_v3, %v2188_v5 }
 0x16b   : > { %v3144_v7 = vpop.f32.mrb[4].mxu0 }
 0x16c   : > { %v3166_v8 = vpop.f32.mrb[4].mxu1  ;;  %v3145_v9 = vpop.f32.mrb[5].mxu0 }
 0x16d   : > { %v3146_v10 = vadd.f32 %v3145_v9, %v3144_v7  ;;  %v3167_v11 = vpop.f32.mrb[5].mxu1  ;;  %v3147_v12 = vpop.f32.mrb[6].mxu0 }
 0x16e   : > { %v3168_v13 = vadd.f32 %v3167_v11, %v3166_v8  ;;  %v3169_v14 = vpop.f32.mrb[6].mxu1  ;;  %v3148_v15 = vpop.f32.mrb[7].mxu0 }
 0x16f   : > { %v2267_v16 = vadd.f32 %v3146_v10, %v2226_v4  ;;  %v3149_v17 = vadd.f32 %v3148_v15, %v3147_v12  ;;  %v3170_v18 = vpop.f32.mrb[7].mxu1 }
 0x170   : > { %v3171_v19 = vadd.f32 %v3170_v18, %v3169_v14 }
 0x171   : > { %v2308_v20 = vadd.f32 %v3168_v13, %v2267_v16  ;;  %v2270_v21 = vadd.f32 %v3149_v17, %v2229_v6 }
 0x173   : > { %v2311_v22 = vadd.f32 %v3171_v19, %v2270_v21 }
 0x18b   : > { %v3188_v23 = vpop.f32.mrb[8].mxu0 }
 0x18c   : > { %v3210_v24 = vpop.f32.mrb[8].mxu1  ;;  %v3189_v25 = vpop.f32.mrb[9].mxu0 }
 0x18d   : > { %v3211_v26 = vpop.f32.mrb[9].mxu1  ;;  %v3190_v27 = vadd.f32 %v3189_v25, %v3188_v23  ;;  %v3191_v29 = vpop.f32.mrb[10].mxu0 }
 0x18e   : > { %v3212_v28 = vadd.f32 %v3211_v26, %v3210_v24  ;;  %v3213_v30 = vpop.f32.mrb[10].mxu1  ;;  %v3192_v31 = vpop.f32.mrb[11].mxu0 }
 0x18f   : > { %v3214_v32 = vpop.f32.mrb[11].mxu1  ;;  %v2349_v33 = vadd.f32 %v3190_v27, %v2308_v20  ;;  %v3193_v34 = vadd.f32 %v3192_v31, %v3191_v29 }
 0x190   : > { %v3215_v35 = vadd.f32 %v3214_v32, %v3213_v30 }
 0x191   : > { %v2390_v36 = vadd.f32 %v3212_v28, %v2349_v33  ;;  %v2352_v37 = vadd.f32 %v3193_v34, %v2311_v22 }
 0x193   : > { %v2393_v38 = vadd.f32 %v3215_v35, %v2352_v37 }
 0x1ab   : > { %v3232_v39 = vpop.f32.mrb[12].mxu0 }
 0x1ac   : > { %v3254_v40 = vpop.f32.mrb[12].mxu1  ;;  %v3233_v41 = vpop.f32.mrb[13].mxu0 }
 0x1ad   : > { %v3234_v42 = vadd.f32 %v3233_v41, %v3232_v39  ;;  %v3255_v43 = vpop.f32.mrb[13].mxu1  ;;  %v3235_v44 = vpop.f32.mrb[14].mxu0 }
 0x1ae   : > { %v3256_v45 = vadd.f32 %v3255_v43, %v3254_v40  ;;  %v3257_v46 = vpop.f32.mrb[14].mxu1  ;;  %v3236_v47 = vpop.f32.mrb[15].mxu0 }
 0x1af   : > { %v2431_v48 = vadd.f32 %v3234_v42, %v2390_v36  ;;  %v3237_v49 = vadd.f32 %v3236_v47, %v3235_v44  ;;  %v3258_v50 = vpop.f32.mrb[15].mxu1 }
 0x1b0   : > { %v3259_v51 = vadd.f32 %v3258_v50, %v3257_v46 }
 0x1b1   : > { %v2472_v52 = vadd.f32 %v3256_v45, %v2431_v48  ;;  %v2434_v53 = vadd.f32 %v3237_v49, %v2393_v38 }
 0x1b3   : > { %v2475_v54 = vadd.f32 %v3259_v51, %v2434_v53 }
 0x1cb   : > { %v3276_v55 = vpop.f32.mrb[16].mxu0 }
 0x1cc   : > { %v3298_v56 = vpop.f32.mrb[16].mxu1  ;;  %v3277_v57 = vpop.f32.mrb[17].mxu0 }
 0x1cd   : > { %v3278_v58 = vadd.f32 %v3277_v57, %v3276_v55  ;;  %v3299_v59 = vpop.f32.mrb[17].mxu1  ;;  %v3279_v60 = vpop.f32.mrb[18].mxu0 }
 0x1ce   : > { %v3300_v61 = vadd.f32 %v3299_v59, %v3298_v56  ;;  %v3301_v62 = vpop.f32.mrb[18].mxu1  ;;  %v3280_v63 = vpop.f32.mrb[19].mxu0 }
 0x1cf   : > { %v2513_v0 = vadd.f32 %v3278_v58, %v2472_v52  ;;  %v3281_v1 = vadd.f32 %v3280_v63, %v3279_v60  ;;  %v3302_v2 = vpop.f32.mrb[19].mxu1 }
 0x1d0   : > { %v3303_v3 = vadd.f32 %v3302_v2, %v3301_v62 }
 0x1d1   : > { %v2554_v4 = vadd.f32 %v3300_v61, %v2513_v0  ;;  %v2516_v5 = vadd.f32 %v3281_v1, %v2475_v54 }
 0x1d3   : > { %v2557_v6 = vadd.f32 %v3303_v3, %v2516_v5 }
 0x1eb   : > { %v3320_v7 = vpop.f32.mrb[20].mxu0 }
 0x1ec   : > { %v3342_v8 = vpop.f32.mrb[20].mxu1  ;;  %v3321_v9 = vpop.f32.mrb[21].mxu0 }
 0x1ed   : > { %v3343_v10 = vpop.f32.mrb[21].mxu1  ;;  %v3322_v11 = vadd.f32 %v3321_v9, %v3320_v7  ;;  %v3323_v13 = vpop.f32.mrb[22].mxu0 }
 0x1ee   : > { %v3344_v12 = vadd.f32 %v3343_v10, %v3342_v8  ;;  %v3345_v14 = vpop.f32.mrb[22].mxu1  ;;  %v3324_v15 = vpop.f32.mrb[23].mxu0 }
 0x1ef   : > { %v3346_v16 = vpop.f32.mrb[23].mxu1  ;;  %v2595_v17 = vadd.f32 %v3322_v11, %v2554_v4  ;;  %v3325_v18 = vadd.f32 %v3324_v15, %v3323_v13 }
 0x1f0   : > { %v3347_v19 = vadd.f32 %v3346_v16, %v3345_v14 }
 0x1f1   : > { %v2636_v20 = vadd.f32 %v3344_v12, %v2595_v17  ;;  %v2598_v21 = vadd.f32 %v3325_v18, %v2557_v6 }
 0x1f3   : > { %v2639_v22 = vadd.f32 %v3347_v19, %v2598_v21 }
 0x20b   : > { %v3364_v23 = vpop.f32.mrb[24].mxu0 }
 0x20c   : > { %v3365_v24 = vpop.f32.mrb[25].mxu0  ;;  %v3386_v31 = vpop.f32.mrb[24].mxu1 }
 0x20d   : > { %v3366_v25 = vadd.f32 %v3365_v24, %v3364_v23  ;;  %v3367_v26 = vpop.f32.mrb[26].mxu0  ;;  %v3387_v32 = vpop.f32.mrb[25].mxu1 }
 0x20e   : > { %v3368_v27 = vpop.f32.mrb[27].mxu0  ;;  %v3388_v33 = vadd.f32 %v3387_v32, %v3386_v31  ;;  %v3389_v34 = vpop.f32.mrb[26].mxu1 }
 0x20f   : > { %v2677_v28 = vadd.f32 %v3366_v25, %v2636_v20  ;;  %v3369_v29 = vadd.f32 %v3368_v27, %v3367_v26  ;;  %v3390_v35 = vpop.f32.mrb[27].mxu1 }
 0x210   : > { %v3391_v36 = vadd.f32 %v3390_v35, %v3389_v34 }
 0x211   : > { %v2680_v30 = vadd.f32 %v3369_v29, %v2639_v22  ;;  %v2718_v37 = vadd.f32 %v3388_v33, %v2677_v28 }
 0x213   : > { %2724 = vmax.xlane.f32.xlu0 %v2718_v37  ;;  %v2721_v38 = vadd.f32 %v3391_v36, %v2680_v30 }
 0x217   : > { %2726 = vmax.xlane.f32.xlu0 %v2721_v38 }
 0x2a0   : > { %v2725_v39 = vpop.xlane.xlu0 %2724 }
 0x2a1   : > { %v2728_v40 = vsub.f32 %v2718_v37, %v2725_v39 }
 0x2a3   : > { %v2730_v41 = vmul.f32 1.442695, %v2728_v40 }
 0x2a4   : > { %v2727_v42 = vpop.xlane.xlu0 %2726 }
 0x2a5   : > { %v2729_v43 = vsub.f32 %v2721_v38, %v2727_v42  ;;  %3683 = vpow2.f32 %v2730_v41 }
 0x2a7   : > { %v2732_v44 = vmul.f32 1.442695, %v2729_v43 }
 0x2a9   : > { %3685 = vpow2.f32 %v2732_v44 }
 0x2af   : > { %v3684_v45 = vpop.eup %3683 }
 0x2b0   : > { %2734 = vadd.xlane.f32.xlu1 %v3684_v45 }
 0x2b3   : > { %v3686_v46 = vpop.eup %3685 }
 0x2b4   : > { %2736 = vadd.xlane.f32.xlu1 %v3686_v46 }
 0x33d   : > { %v2735_v47 = vpop.xlane.xlu1 %2734 }
 0x33e   : > { %3687 = vlog2.f32 %v2735_v47 }
 0x341   : > { %v2737_v48 = vpop.xlane.xlu1 %2736 }
 0x342   : > { %3689 = vlog2.f32 %v2737_v48 }
 0x348   : > { %v3688_v49 = vpop.eup %3687 }
 0x349   : > { %v2739_v50 = vmul.f32 0.6931472, %v3688_v49 }
 0x34b   : > { %v2742_v51 = vsub.f32 %v2728_v40, %v2739_v50 }
 0x34c   : > { %v3690_v52 = vpop.eup %3689 }
 0x34d   : > { %2744 = vst [vmem:[%s204_s22] sm:$0xff] %v2742_v51  ;;  %v2741_v53 = vmul.f32 0.6931472, %v3690_v52 }
 0x34f   : > { %v2743_v54 = vsub.f32 %v2729_v43, %v2741_v53 }
 0x351   : > { %2745 = vst [vmem:[%s204_s22 + $0x8] sm:$0xff] %v2743_v54 }
 0x352   : > { %3762 = shalt.err (!%p3759_p7)
}
 0x353   : > { %s3763_s25 = scalar_lea.hbm %s4070_s27, 256  ;;  %s3767_s9 = scalar_lea.hbm %s4117_s3, 512 }
 0x354   : > { %p3764_p9 = scmp.ne.s32.totalorder %s4070_s27, %s3763_s25  ;;  %p3768_p5 = scmp.lt.u32.totalorder %s4070_s27, %s4117_s3 }
 0x355   : > { %p3769_p11 = scmp.lt.u32.totalorder %s3767_s9, %s3763_s25  ;;  %p3771_p4 = scmp.lt.u32.totalorder %s3763_s25, %s4070_s27 }
 0x356   : > { %p3765_p2 = pnand %p3764_p9, %p3942_p12 }
 0x357   : > { %p3770_p1 = por %p3769_p11, %p3768_p5 }
 0x358   : > { %p3766_p0 = pneg %p3765_p2 }
 0x359   : > { %p3772_p6 = por %p3771_p4, %p3770_p1 }
 0x35b   : > { %p3773_p8 = pnand %p3772_p6, %p3766_p0 }
 0x35d   : > { %3776 = shalt.err (!%p3773_p8)
}
 0x35e   : > { %s3829_s4 = smov 128   ;;  %s3830_s22 = smov 8  }
 0x35f   : > { %3401 = dma.vmem_to_hbm [thread:$0]  (%p3942_p12), %s4065_s26, 256, %s4070_s27, %s2747_s28, %s3829_s4, %s3829_s4, %s3830_s22  }
 0x360 PF: > { %s2775_s5 = sand.u32 1, %s3807_s12   ;;  %p4132_p10 = scmp.ne.s32.totalorder %s4122_s19, 0 }
 0x361   : > { %p4133_p13 = scmp.ge.s32.totalorder %s3819_s15, 2  ;;  %s2776_s10 = scalar_lea.sflag [#allocation5], %s2775_s5 }
 0x363   : > { %p3412_p3 = pnand %p4133_p13, %p4132_p10 }
 0x365   : > { %3802 = dma.done.wait (!%p3412_p3), %s2776_s10, 256  }
 0x366   : > { %3804 = vsyncadd (!%p3412_p3), %s2776_s10, 4294967040  ;;  %p17_p7 = scmp.ge.s32.totalorder %s3907_s24, 4   ;;  %s4134_s12 = smov %s3811_s13 }
 0x367   : > { %s4135_s13 = smov %s3815_s14  ;;  %s4136_s14 = smov %s3938_s17 }
 0x368   : > { %s4137_s15 = smov %s3907_s24  ;;  %19 = sbr.rel (!%p17_p7) target bundleno = 6 (0x6), region = 81 }
 0x36f   :  { %2781 = vsyncpa [#allocation4], 1 }
 0x370   :  { %2783 = vsyncpa [#allocation4 + $0x1], 1 }
 0x371   :  { %2784 = vsyncpa [#allocation7], 1 }
 0x372   :  { %2785 = vsyncpa [#allocation5], 1 }
 0x373   :  { %2787 = vsyncpa [#allocation5 + $0x1], 1 }

</bundles_post_ra>
